<compile_context>
chip_gen: v6e
topology: v6e:2x2x1
jax: 0.10.0
libtpu: 0.0.40
codegen_flags: <defaults>
</compile_context>

<pallas_src>
import functools

import jax
import jax.numpy as jnp
from jax.experimental import pallas as pl
from jax.experimental.pallas import tpu as pltpu


LANE = 128        # vreg lane width: pad feature dims to this
SUBLANE = 8       # sublane granularity for batch tiles
MAX_TILE_B = 2048  # per-tile VMEM at 2048 rows is still only ~1.5 MiB


def _round_up(x: int, m: int) -> int:
    return (x + m - 1) // m * m


def _choose_batch_tiling(B: int):
    """Balanced batch tiles; >=2 (even) tiles when possible for v7x megacore."""
    num_tiles = pl.cdiv(B, MAX_TILE_B)
    if B >= 2 * SUBLANE:
        num_tiles = max(num_tiles, 2)
    if num_tiles > 1:
        num_tiles = 2 * pl.cdiv(num_tiles, 2)          # even tile count
    tile_b = _round_up(pl.cdiv(B, num_tiles), SUBLANE)  # <= MAX_TILE_B
    b_pad = num_tiles * tile_b
    return num_tiles, tile_b, b_pad


def dqn_mlp_kernel(x_ref, w1_ref, b1_ref, w2_ref, b2_ref, w3_ref, b3_ref, o_ref):
    """Fused fc1 -> relu -> fc2 -> relu -> fc3 on one (TILE_B, *) batch tile.

    fc1 is f32 (x arrives f32, tiny contraction dim); fc2/fc3 use bf16
    weights/activations with f32 MXU accumulation; output is written bf16.
    """
    x = x_ref[...]                                                    # (TB, S) f32

    h1 = jnp.dot(x, w1_ref[...], preferred_element_type=jnp.float32) + b1_ref[...]
    h1 = jnp.maximum(h1, 0.0).astype(jnp.bfloat16)                    # (TB, H_pad)

    h2 = jnp.dot(h1, w2_ref[...], preferred_element_type=jnp.float32) + b2_ref[...]
    h2 = jnp.maximum(h2, 0.0).astype(jnp.bfloat16)                    # (TB, H_pad)

    o_ref[...] = (
        jnp.dot(h2, w3_ref[...], preferred_element_type=jnp.float32) + b3_ref[...]
    ).astype(o_ref.dtype)                                             # (TB, A_pad) bf16


def prepare_params(params):
    """Pad feature dims to 128 lanes and cast ONCE (hoisted out of the
    per-forward path; re-run only when parameters change)."""
    S, H = params["w1"].shape
    A = params["w3"].shape[1]
    h_pad = _round_up(H, LANE)
    a_pad = _round_up(A, LANE)

    def pad2(a, rows, cols):
        return jnp.pad(a, ((0, rows - a.shape[0]), (0, cols - a.shape[1])))

    return {
        "w1": pad2(params["w1"], S, h_pad).astype(jnp.float32),       # (S, 128) f32
        "b1": pad2(params["b1"], 1, h_pad).astype(jnp.float32),
        "w2": pad2(params["w2"], h_pad, h_pad).astype(jnp.bfloat16),  # (128, 128) bf16
        "b2": pad2(params["b2"], 1, h_pad).astype(jnp.float32),
        "w3": pad2(params["w3"], h_pad, a_pad).astype(jnp.bfloat16),  # (128, 128) bf16
        "b3": pad2(params["b3"], 1, a_pad).astype(jnp.float32),
    }


@functools.partial(jax.jit, static_argnames=("action_size",))
def dqn_forward(state, prepped, *, action_size):
    """Run the fused DQN MLP Pallas kernel.

    state:   (B, state_size) float32
    prepped: output of prepare_params (padded / pre-cast weights & biases)
    returns  (B, action_size) float32 Q-values
    """
    B, S = state.shape
    h_pad = prepped["w1"].shape[1]
    a_pad = prepped["w3"].shape[1]

    num_tiles, tile_b, b_pad = _choose_batch_tiling(B)

    # Only pad the batch dim, and only when needed (static check at trace time).
    x = state if b_pad == B else jnp.pad(state, ((0, b_pad - B), (0, 0)))

    # Resident specs: same block every grid step -> weights fetched once.
    resident = lambda shape: pl.BlockSpec(shape, lambda i: (0, 0))

    out_pad = pl.pallas_call(
        dqn_mlp_kernel,
        out_shape=jax.ShapeDtypeStruct((b_pad, a_pad), jnp.bfloat16),
        grid=(num_tiles,),
        in_specs=[
            pl.BlockSpec((tile_b, S), lambda i: (i, 0)),   # x: tiled over batch
            resident((S, h_pad)),                          # w1 (f32)
            resident((1, h_pad)),                          # b1
            resident((h_pad, h_pad)),                      # w2 (bf16)
            resident((1, h_pad)),                          # b2
            resident((h_pad, a_pad)),                      # w3 (bf16)
            resident((1, a_pad)),                          # b3
        ],
        out_specs=pl.BlockSpec((tile_b, a_pad), lambda i: (i, 0)),
        compiler_params=pltpu.CompilerParams(
            dimension_semantics=("parallel",),             # megacore on v7x
        ),
    )(x, prepped["w1"], prepped["b1"], prepped["w2"], prepped["b2"],
      prepped["w3"], prepped["b3"])

    # Single small fused slice + upcast back to f32 for the caller.
    return out_pad[:B, :action_size].astype(jnp.float32)


def init_params(key, state_size, action_size, hidden=64):
    """PyTorch-Linear-style uniform init U[-1/sqrt(fan_in), 1/sqrt(fan_in)]."""
    ks = jax.random.split(key, 6)

    def uniform(k, shape, fan_in):
        bound = 1.0 / jnp.sqrt(jnp.float32(fan_in))
        return jax.random.uniform(k, shape, jnp.float32, -bound, bound)

    return {
        "w1": uniform(ks[0], (state_size, hidden), state_size),
        "b1": uniform(ks[1], (1, hidden), state_size),
        "w2": uniform(ks[2], (hidden, hidden), hidden),
        "b2": uniform(ks[3], (1, hidden), hidden),
        "w3": uniform(ks[4], (hidden, action_size), hidden),
        "b3": uniform(ks[5], (1, action_size), hidden),
    }


def _ref_forward_f32(state, params):
    """Exact PyTorch f32 semantics."""
    h1 = jnp.maximum(state @ params["w1"] + params["b1"], 0.0)
    h2 = jnp.maximum(h1 @ params["w2"] + params["b2"], 0.0)
    return h2 @ params["w3"] + params["b3"]


def _ref_forward_mixed(state, params):
    """Same precision recipe as the kernel (f32 fc1, bf16 fc2/fc3, bf16 out)."""
    h1 = jnp.maximum(
        jnp.dot(state, params["w1"], preferred_element_type=jnp.float32)
        + params["b1"], 0.0,
    ).astype(jnp.bfloat16)
    h2 = jnp.maximum(
        jnp.dot(h1, params["w2"].astype(jnp.bfloat16),
                preferred_element_type=jnp.float32) + params["b2"], 0.0,
    ).astype(jnp.bfloat16)
    out = (
        jnp.dot(h2, params["w3"].astype(jnp.bfloat16),
                preferred_element_type=jnp.float32) + params["b3"]
    ).astype(jnp.bfloat16)
    return out.astype(jnp.float32)


if __name__ == "__main__":
    key = jax.random.PRNGKey(0)
    k_param, k_state = jax.random.split(key)

    batch = 8
    state_size = 8
    action_size = 4

    params = init_params(k_param, state_size, action_size)
    prepped = prepare_params(params)            # one-time pad/cast (hoisted)
    state = jax.random.normal(k_state, (batch, state_size), jnp.float32)

    q_values = jax.block_until_ready(
        dqn_forward(state, prepped, action_size=action_size)
    )
    assert q_values.shape == (batch, action_size)
    assert q_values.dtype == jnp.float32

    # Tight check vs. a pure-JAX reference using the identical precision recipe.
    ref_mixed = _ref_forward_mixed(state, params)
    assert jnp.allclose(q_values, ref_mixed, atol=3e-2, rtol=3e-2)

    # Loose check vs. exact f32 PyTorch semantics (bf16 fc2/fc3 quantization).
    ref_f32 = _ref_forward_f32(state, params)
    assert jnp.allclose(q_values, ref_f32, atol=1e-1, rtol=1e-1)

    print("KERNEL_OK")
</pallas_src>

<mosaic_0001>
module attributes {stable_mosaic.version = 11 : i64} {
  func.func @dqn_mlp_kernel(%arg0: i32, %arg1: memref<8x8xf32, #tpu.memory_space<vmem>>, %arg2: memref<8x128xf32, #tpu.memory_space<vmem>>, %arg3: memref<1x128xf32, #tpu.memory_space<vmem>>, %arg4: memref<128x128xbf16, #tpu.memory_space<vmem>>, %arg5: memref<1x128xf32, #tpu.memory_space<vmem>>, %arg6: memref<128x128xbf16, #tpu.memory_space<vmem>>, %arg7: memref<1x128xf32, #tpu.memory_space<vmem>>, %arg8: memref<8x128xbf16, #tpu.memory_space<vmem>>) attributes {dimension_semantics = [#tpu.dimension_semantics<parallel>], iteration_bounds = array<i64: 1>, scalar_prefetch = 0 : i64, scratch_operands = 0 : i64, tpu.core_type = #tpu.core_type<tc>, window_params = [{transform_indices = @transform_0, window_bounds = array<i64: 8, 8>}, {pipeline_mode = #tpu.pipeline_mode<synchronous>, transform_indices = @transform_1, window_bounds = array<i64: 8, 128>}, {pipeline_mode = #tpu.pipeline_mode<synchronous>, transform_indices = @transform_2, window_bounds = array<i64: 1, 128>}, {pipeline_mode = #tpu.pipeline_mode<synchronous>, transform_indices = @transform_3, window_bounds = array<i64: 128, 128>}, {pipeline_mode = #tpu.pipeline_mode<synchronous>, transform_indices = @transform_4, window_bounds = array<i64: 1, 128>}, {pipeline_mode = #tpu.pipeline_mode<synchronous>, transform_indices = @transform_5, window_bounds = array<i64: 128, 128>}, {pipeline_mode = #tpu.pipeline_mode<synchronous>, transform_indices = @transform_6, window_bounds = array<i64: 1, 128>}, {transform_indices = @transform_7, window_bounds = array<i64: 8, 128>}]} {
    %c0 = arith.constant 0 : index
    %c0_0 = arith.constant 0 : index
    %0 = vector.load %arg1[%c0, %c0_0] : memref<8x8xf32, #tpu.memory_space<vmem>>, vector<8x8xf32>
    %c0_1 = arith.constant 0 : index
    %c0_2 = arith.constant 0 : index
    %1 = vector.load %arg2[%c0_1, %c0_2] : memref<8x128xf32, #tpu.memory_space<vmem>>, vector<8x128xf32>
    %cst = arith.constant dense<0.000000e+00> : vector<8x128xf32>
    %2 = tpu.matmul %0, %1, %cst {dimension_numbers = #tpu.dot_dimension_numbers<[1], [0], [0], [1], [0, 0, 1, 1], [], []>} : vector<8x8xf32>, vector<8x128xf32>, vector<8x128xf32> -> vector<8x128xf32>
    %c0_3 = arith.constant 0 : index
    %c0_4 = arith.constant 0 : index
    %3 = vector.load %arg3[%c0_3, %c0_4] : memref<1x128xf32, #tpu.memory_space<vmem>>, vector<1x128xf32>
    %4 = vector.broadcast %3 : vector<1x128xf32> to vector<8x128xf32>
    %5 = arith.addf %2, %4 : vector<8x128xf32>
    %cst_5 = arith.constant 0.000000e+00 : f32
    %6 = vector.broadcast %cst_5 : f32 to vector<8x128xf32>
    %7 = arith.maximumf %5, %6 : vector<8x128xf32>
    %8 = arith.truncf %7 : vector<8x128xf32> to vector<8x128xbf16>
    %c0_6 = arith.constant 0 : index
    %c0_7 = arith.constant 0 : index
    %9 = vector.load %arg4[%c0_6, %c0_7] : memref<128x128xbf16, #tpu.memory_space<vmem>>, vector<128x128xbf16>
    %cst_8 = arith.constant dense<0.000000e+00> : vector<8x128xf32>
    %10 = tpu.matmul %8, %9, %cst_8 {dimension_numbers = #tpu.dot_dimension_numbers<[1], [0], [0], [1], [0, 0, 1, 1], [], []>} : vector<8x128xbf16>, vector<128x128xbf16>, vector<8x128xf32> -> vector<8x128xf32>
    %c0_9 = arith.constant 0 : index
    %c0_10 = arith.constant 0 : index
    %11 = vector.load %arg5[%c0_9, %c0_10] : memref<1x128xf32, #tpu.memory_space<vmem>>, vector<1x128xf32>
    %12 = vector.broadcast %11 : vector<1x128xf32> to vector<8x128xf32>
    %13 = arith.addf %10, %12 : vector<8x128xf32>
    %cst_11 = arith.constant 0.000000e+00 : f32
    %14 = vector.broadcast %cst_11 : f32 to vector<8x128xf32>
    %15 = arith.maximumf %13, %14 : vector<8x128xf32>
    %16 = arith.truncf %15 : vector<8x128xf32> to vector<8x128xbf16>
    %c0_12 = arith.constant 0 : index
    %c0_13 = arith.constant 0 : index
    %17 = vector.load %arg6[%c0_12, %c0_13] : memref<128x128xbf16, #tpu.memory_space<vmem>>, vector<128x128xbf16>
    %cst_14 = arith.constant dense<0.000000e+00> : vector<8x128xf32>
    %18 = tpu.matmul %16, %17, %cst_14 {dimension_numbers = #tpu.dot_dimension_numbers<[1], [0], [0], [1], [0, 0, 1, 1], [], []>} : vector<8x128xbf16>, vector<128x128xbf16>, vector<8x128xf32> -> vector<8x128xf32>
    %c0_15 = arith.constant 0 : index
    %c0_16 = arith.constant 0 : index
    %19 = vector.load %arg7[%c0_15, %c0_16] : memref<1x128xf32, #tpu.memory_space<vmem>>, vector<1x128xf32>
    %20 = vector.broadcast %19 : vector<1x128xf32> to vector<8x128xf32>
    %21 = arith.addf %18, %20 : vector<8x128xf32>
    %22 = arith.truncf %21 : vector<8x128xf32> to vector<8x128xbf16>
    %c0_17 = arith.constant 0 : index
    %c0_18 = arith.constant 0 : index
    %23 = vector.load %arg8[%c0_17, %c0_18] : memref<8x128xbf16, #tpu.memory_space<vmem>>, vector<8x128xbf16>
    tpu.vector_store %arg8[%c0_17, %c0_18], %22 {strides = array<i32>} : memref<8x128xbf16, #tpu.memory_space<vmem>>, vector<8x128xbf16>,
    return
  }
  func.func @transform_0(%arg0: i32) -> (i32, i32) {
    %c0_i32 = arith.constant 0 : i32
    %c0_i32_0 = arith.constant 0 : i32
    return %arg0, %c0_i32 : i32, i32
  }
  func.func @transform_1(%arg0: i32) -> (i32, i32) {
    %c0_i32 = arith.constant 0 : i32
    %c0_i32_0 = arith.constant 0 : i32
    %c0_i32_1 = arith.constant 0 : i32
    return %c0_i32, %c0_i32_0 : i32, i32
  }
  func.func @transform_2(%arg0: i32) -> (i32, i32) {
    %c0_i32 = arith.constant 0 : i32
    %c0_i32_0 = arith.constant 0 : i32
    %c0_i32_1 = arith.constant 0 : i32
    return %c0_i32, %c0_i32_0 : i32, i32
  }
  func.func @transform_3(%arg0: i32) -> (i32, i32) {
    %c0_i32 = arith.constant 0 : i32
    %c0_i32_0 = arith.constant 0 : i32
    %c0_i32_1 = arith.constant 0 : i32
    return %c0_i32, %c0_i32_0 : i32, i32
  }
  func.func @transform_4(%arg0: i32) -> (i32, i32) {
    %c0_i32 = arith.constant 0 : i32
    %c0_i32_0 = arith.constant 0 : i32
    %c0_i32_1 = arith.constant 0 : i32
    return %c0_i32, %c0_i32_0 : i32, i32
  }
  func.func @transform_5(%arg0: i32) -> (i32, i32) {
    %c0_i32 = arith.constant 0 : i32
    %c0_i32_0 = arith.constant 0 : i32
    %c0_i32_1 = arith.constant 0 : i32
    return %c0_i32, %c0_i32_0 : i32, i32
  }
  func.func @transform_6(%arg0: i32) -> (i32, i32) {
    %c0_i32 = arith.constant 0 : i32
    %c0_i32_0 = arith.constant 0 : i32
    %c0_i32_1 = arith.constant 0 : i32
    return %c0_i32, %c0_i32_0 : i32, i32
  }
  func.func @transform_7(%arg0: i32) -> (i32, i32) {
    %c0_i32 = arith.constant 0 : i32
    %c0_i32_0 = arith.constant 0 : i32
    return %arg0, %c0_i32 : i32, i32
  }
}

</mosaic_0001>

<bundles_post_ra>
// kernel: dqn_forward.1
= control target key start
LH: loop header
LB: loop body
LE: loop exit
PB: predicated region body
PF: predicated region fallthrough
CT: control target
= control target key end

     0   :  { %12 = vsyncpa [#allocation3], 0  ;;  %s663_s0 = inlined_call_operand.hbm [shape: f32[8,8], index: 0, kind: input, shape index: {}]   ;;  %s664_s1 = inlined_call_operand.hbm [shape: f32[8,128], index: 1, kind: input, shape index: {}]   ;;  %s665_s2 = inlined_call_operand.vmem [shape: f32[1,128], index: 2, kind: input, shape index: {}]   ;;  %s666_s3 = inlined_call_operand.hbm [shape: bf16[128,128], index: 3, kind: input, shape index: {}]   ;;  %s667_s4 = inlined_call_operand.vmem [shape: f32[1,128], index: 4, kind: input, shape index: {}]   ;;  %s668_s5 = inlined_call_operand.hbm [shape: bf16[128,128], index: 5, kind: input, shape index: {}]   ;;  %s669_s6 = inlined_call_operand.vmem [shape: f32[1,128], index: 6, kind: input, shape index: {}]   ;;  %s670_s7 = inlined_call_operand.vmem [shape: bf16[8,128], index: 7, kind: output, shape index: {}]  }
   0x1   :  { %13 = vsyncpa [#allocation5], 0 }
   0x2   :  { %14 = vsyncpa [#allocation8], 0  ;;  %s591_s24 = smov [#allocation4]   ;;  %s592_s26 = smov [#allocation2]  }
   0x3   :  { %s31_s25 = sshll.u32 %s591_s24, 4  ;;  %s21_s27 = sshll.u32 %s592_s26, 4  ;;  %s32_s25 = int_to_ptr.vmem [resolvable:$true] %s31_s25  ;;  %s22_s27 = int_to_ptr.vmem [resolvable:$true] %s21_s27 }
   0x4   :  { %s513_s28 = scalar_lea.vmem %s32_s25, 128  ;;  %p518_p1 = scmp.lt.s32.totalorder %s32_s25, %s32_s25 }
   0x5   :  { %p514_p0 = scmp.ne.s32.totalorder %s32_s25, %s513_s28  ;;  %p519_p2 = scmp.lt.s32.totalorder %s513_s28, %s513_s28 }
   0x7   :  { %p520_p3 = por %p519_p2, %p518_p1 }
   0x9   :  { %p521_p4 = pnand %p520_p3, %p514_p0 }
   0xb   :  { %524 = shalt.err (!%p521_p4)
}
   0xc   :  { %34 = dma.hbm_to_vmem [thread:$0]  %s664_s1, 128, %s32_s25, [#allocation5]  }
   0xd   :  { %s533_s8 = scalar_lea.vmem %s22_s27, 128  ;;  %p538_p6 = scmp.lt.s32.totalorder %s22_s27, %s22_s27 }
   0xe   :  { %p534_p5 = scmp.ne.s32.totalorder %s22_s27, %s533_s8  ;;  %p539_p7 = scmp.lt.s32.totalorder %s533_s8, %s533_s8 }
  0x10   :  { %p540_p8 = por %p539_p7, %p538_p6 }
  0x12   :  { %p541_p9 = pnand %p540_p8, %p534_p5 }
  0x14   :  { %544 = shalt.err (!%p541_p9)
}
  0x15   :  { %24 = dma.hbm_to_vmem [thread:$0]  %s663_s0, 128, %s22_s27, [#allocation3]  }
  0x16   :  { %s593_s11 = smov [#allocation6]  }
  0x17   :  { %s42_s12 = sshll.u32 %s593_s11, 4  ;;  %s43_s12 = int_to_ptr.vmem [resolvable:$true] %s42_s12 }
  0x18   :  { %s553_s13 = scalar_lea.vmem %s43_s12, 1024  ;;  %p558_p11 = scmp.lt.s32.totalorder %s43_s12, %s43_s12 }
  0x19   :  { %p554_p10 = scmp.ne.s32.totalorder %s43_s12, %s553_s13  ;;  %p559_p12 = scmp.lt.s32.totalorder %s553_s13, %s553_s13 }
  0x1b   :  { %p560_p13 = por %p559_p12, %p558_p11 }
  0x1d   :  { %p561_p0 = pnand %p560_p13, %p554_p10 }
  0x1f   :  { %564 = shalt.err (!%p561_p0)
}
  0x20   :  { %s594_s1 = smov 64   ;;  %s595_s14 = smov 4  }
  0x21   :  { %48 = dma.hbm_to_vmem [thread:$0]  %s666_s3, 1024, %s43_s12, [#allocation5], %s594_s1, %s594_s1, %s595_s14  }
  0x22   :  { %s596_s17 = smov [#allocation7]  }
  0x23   :  { %s56_s18 = sshll.u32 %s596_s17, 4  ;;  %s57_s18 = int_to_ptr.vmem [resolvable:$true] %s56_s18 }
  0x24   :  { %s573_s0 = scalar_lea.vmem %s57_s18, 1024  ;;  %p578_p2 = scmp.lt.s32.totalorder %s57_s18, %s57_s18 }
  0x25   :  { %p574_p1 = scmp.ne.s32.totalorder %s57_s18, %s573_s0  ;;  %p579_p3 = scmp.lt.s32.totalorder %s573_s0, %s573_s0 }
  0x27   :  { %p580_p4 = por %p579_p3, %p578_p2 }
  0x29   :  { %p581_p5 = pnand %p580_p4, %p574_p1 }
  0x2b   :  { %584 = shalt.err (!%p581_p5)
}
  0x2c   :  { %62 = dma.hbm_to_vmem [thread:$0]  %s668_s5, 1024, %s57_s18, [#allocation8], %s594_s1, %s594_s1, %s595_s14  }
  0x2d   :  { %585 = dma.done.wait [#allocation3], 128  }
  0x2e   :  { %586 = vsyncadd [#allocation3], 4294967168 }
  0x2f   :  { %587 = dma.done.wait [#allocation5], 1152  }
  0x30   :  { %588 = vsyncadd [#allocation5], 4294966144 }
  0x31   :  { %589 = dma.done.wait [#allocation8], 1024  }
  0x32   :  { %590 = vsyncadd [#allocation8], 4294966272  ;;  %v597_v0 = vmov 0.0   ;;  %vm598_vm0 = vmmov 0   ;;  %vm87_vm1 = vcmask 64512   ;;  %v79_v1 = vld [vmem:[#allocation4] sm:$0xff] }
  0x33   :  { %436 = vmatprep.subr.mxu0 %v597_v0  ;;  %438 = vmatprep.mubr.msk.f32.mxu0 %vm598_vm0, %v597_v0  ;;  %v78_v2 = vld [vmem:[#allocation2] sm:$0xff]  ;;  %v489_v3 = vld [vmem:[#allocation6 + $0x38] sm:$0xff]   ;;  %v491_v5 = vld [vmem:[#allocation6 + $0x28] sm:$0xff]  }
  0x34   :  { %441 = vmatprep.subr.bf16.mxu1 %v597_v0  ;;  %457 = vmatprep.mubr.msk.bf16.mxu1 %vm598_vm0, %v597_v0  ;;  %v490_v4 = vld [vmem:[#allocation6 + $0x30] sm:$0xff]   ;;  %v492_v6 = vld [vmem:[#allocation6 + $0x20] sm:$0xff]   ;;  %v493_v7 = vld [vmem:[#allocation6 + $0x18] sm:$0xff]  }
  0x35   :  { %437 = vmatpush3.msra.mxu0 %v79_v1  ;;  %442 = vmatpush3.bf16.msra.mxu1 %v489_v3  ;;  %v494_v8 = vld [vmem:[#allocation6 + $0x10] sm:$0xff]   ;;  %v495_v9 = vld [vmem:[#allocation6 + $0x8] sm:$0xff]   ;;  %v496_v10 = vld [vmem:[#allocation6] sm:$0xff]  }
  0x36   :  { %439 = vmatmul.mubr.msk.f32.vlgmr.msra.gmra.mxu0 %vm87_vm1, %v78_v2  ;;  %461 = vmatprep.subr.bf16.mxu0 %v597_v0  ;;  %v497_v11 = vld [vmem:[#allocation7 + $0x38] sm:$0xff]   ;;  %v498_v12 = vld [vmem:[#allocation7 + $0x30] sm:$0xff]   ;;  %v499_v13 = vld [vmem:[#allocation7 + $0x28] sm:$0xff]  }
  0x37   :  { %477 = vmatprep.mubr.msk.bf16.mxu0 %vm598_vm0, %v597_v0  ;;  %443 = vmatprep.subr.bf16.mxu1 %v597_v0  ;;  %v500_v14 = vld [vmem:[#allocation7 + $0x20] sm:$0xff]   ;;  %v501_v15 = vld [vmem:[#allocation7 + $0x18] sm:$0xff]   ;;  %v502_v16 = vld [vmem:[#allocation7 + $0x10] sm:$0xff]  }
  0x38   :  { %462 = vmatpush3.bf16.msra.mxu0 %v497_v11  ;;  %v396_v17 = vld [vmem:[%s665_s2] ss:$0 sm:$0xff]  ;;  %v503_v23 = vld [vmem:[#allocation7 + $0x8] sm:$0xff]   ;;  %v504_v24 = vld [vmem:[#allocation7] sm:$0xff]  }
  0x39   :  { %444 = vmatpush3.bf16.msra.mxu1 %v490_v4  ;;  %463 = vmatprep.subr.bf16.mxu0 %v597_v0  ;;  %v398_v25 = vld [vmem:[%s667_s4] ss:$0 sm:$0xff] }
  0x3a   :  { %445 = vmatprep.subr.bf16.mxu1 %v597_v0  ;;  %v407_v33 = vld [vmem:[%s669_s6] ss:$0 sm:$0xff] }
  0x3c   :  { %464 = vmatpush3.bf16.msra.mxu0 %v498_v12 }
  0x3d   :  { %446 = vmatpush3.bf16.msra.mxu1 %v491_v5  ;;  %465 = vmatprep.subr.bf16.mxu0 %v597_v0 }
  0x3e   :  { %447 = vmatprep.subr.bf16.mxu1 %v597_v0 }
  0x40   :  { %466 = vmatpush3.bf16.msra.mxu0 %v499_v13 }
  0x41   :  { %448 = vmatpush3.bf16.msra.mxu1 %v492_v6  ;;  %467 = vmatprep.subr.bf16.mxu0 %v597_v0 }
  0x42   :  { %449 = vmatprep.subr.bf16.mxu1 %v597_v0 }
  0x44   :  { %468 = vmatpush3.bf16.msra.mxu0 %v500_v14 }
  0x45   :  { %450 = vmatpush3.bf16.msra.mxu1 %v493_v7  ;;  %469 = vmatprep.subr.bf16.mxu0 %v597_v0 }
  0x46   :  { %451 = vmatprep.subr.bf16.mxu1 %v597_v0 }
  0x48   :  { %470 = vmatpush3.bf16.msra.mxu0 %v501_v15 }
  0x49   :  { %452 = vmatpush3.bf16.msra.mxu1 %v494_v8  ;;  %471 = vmatprep.subr.bf16.mxu0 %v597_v0 }
  0x4a   :  { %453 = vmatprep.subr.bf16.mxu1 %v597_v0 }
  0x4c   :  { %472 = vmatpush3.bf16.msra.mxu0 %v502_v16 }
  0x4d   :  { %454 = vmatpush3.bf16.msra.mxu1 %v495_v9  ;;  %473 = vmatprep.subr.bf16.mxu0 %v597_v0 }
  0x4e   :  { %455 = vmatprep.subr.bf16.mxu1 %v597_v0 }
  0x50   :  { %474 = vmatpush3.bf16.msra.mxu0 %v503_v23 }
  0x51   :  { %456 = vmatpush3.bf16.msra.mxu1 %v496_v10  ;;  %475 = vmatprep.subr.bf16.mxu0 %v597_v0 }
  0x54   :  { %476 = vmatpush3.bf16.msra.mxu0 %v504_v24 }
  0xf6   :  { %v157_v18 = vpop.f32.mrf.mxu0 }
  0xf7   :  { %v158_v19 = vadd.f32 %v396_v17, %v157_v18 }
  0xf8   :  { %v440_v20 = vpop.f32.mrf.mxu0 }
  0xf9   :  { %v161_v21 = vmax.f32 %v158_v19, 0.0 }
  0xfb   :  { %v162_v22 = vpack.c.bf16 %v161_v21, %v161_v21 }
  0xfd   :  { %458 = vmatmul.mubr.bf16.vlgmr.msra.gmra.mxu1 %v162_v22 }
 0x1bd   :  { %v268_v26 = vpop.f32.mrf.mxu1 }
 0x1be   :  { %v269_v27 = vadd.f32 %v398_v25, %v268_v26 }
 0x1bf   :  { %v459_v28 = vpop.f32.mrf.mxu1 }
 0x1c0   :  { %v274_v29 = vmax.f32 %v269_v27, 0.0 }
 0x1c1   :  { %v271_v30 = vpop.f32.mrf.mxu1 }
 0x1c2   :  { %v275_v31 = vpack.c.bf16 %v274_v29, %v274_v29 }
 0x1c3   :  { %v460_v32 = vpop.f32.mrf.mxu1 }
 0x1c4   :  { %478 = vmatmul.mubr.bf16.vlgmr.msra.gmra.mxu0 %v275_v31 }
 0x284   :  { %v381_v34 = vpop.f32.mrf.mxu0 }
 0x285   :  { %v382_v35 = vadd.f32 %v407_v33, %v381_v34 }
 0x286   :  { %v479_v36 = vpop.f32.mrf.mxu0 }
 0x287   :  { %v387_v37 = vpack.c.bf16 %v382_v35, %v382_v35 }
 0x288   :  { %v384_v38 = vpop.f32.mrf.mxu0 }
 0x289   :  { %388 = vst [vmem:[%s670_s7] sm:$0xf] %v387_v37 }
 0x28a   :  { %v480_v39 = vpop.f32.mrf.mxu0 }
 0x28b   :  { %393 = vsyncpa [#allocation3], 1 }
 0x28c   :  { %394 = vsyncpa [#allocation5], 1 }
 0x28d   :  { %395 = vsyncpa [#allocation8], 1 }

</bundles_post_ra>
